<compile_context>
chip_gen: v6e
topology: v6e:2x2x1
jax: 0.10.0
libtpu: 0.0.40
codegen_flags: <defaults>
</compile_context>

<pallas_src>
import jax
import jax.numpy as jnp
from jax.experimental import pallas as pl
from jax.experimental.pallas import tpu as pltpu


def _identity_kernel(x_ref, o_ref):
    # IdentityWrapper's only data path is the tensor itself: a VMEM tile copy.
    o_ref[...] = x_ref[...]


_LANE = 128
_MAX_COLS = 4096
# ~2 MiB block; in+out, each double-buffered => ~8 MiB VMEM footprint, which
# fits the default scoped VMEM on every generation (16 MiB v5e, 32 MiB v6e/v7x),
# while large enough to sit near the HBM copy roofline.
_TARGET_BLOCK_BYTES = 2 * 1024 * 1024


def _lane_dense_2d(total: int):
    """Factor `total` elements into (rows, cols) with cols a big multiple of 128."""
    if total % _LANE != 0:
        # TODO(synk): totals not divisible by 128 fall back to one full-extent
        # block (still correct, just not lane-dense).
        return 1, total
    cols = _LANE
    while total % (cols * 2) == 0 and cols * 2 <= _MAX_COLS:
        cols *= 2
    return total // cols, cols


def _pallas_identity(x: jnp.ndarray) -> jnp.ndarray:
    """Identity over an arbitrary tensor via a lane-dense, row-tiled Pallas copy."""
    orig_shape = x.shape
    dtype = x.dtype
    itemsize = jnp.dtype(dtype).itemsize
    # Sublane packing: 8 rows (f32), 16 (bf16/f16), 32 (int8/fp8) per vreg tile.
    sublane_pack = {4: 8, 2: 16, 1: 32}.get(itemsize, 8)

    rows, cols = _lane_dense_2d(x.size)
    x2d = x.reshape(rows, cols)  # layout glue only; XLA treats it as a bitcast

    max_tile_rows = max(
        sublane_pack,
        (_TARGET_BLOCK_BYTES // (cols * itemsize)) // sublane_pack * sublane_pack,
    )
    # Small inputs: one full-extent block, single grid step (no pipeline overhead).
    tile_rows = rows if rows <= max_tile_rows else max_tile_rows
    grid = (pl.cdiv(rows, tile_rows),)  # ragged last block handled by masked stores

    y2d = pl.pallas_call(
        _identity_kernel,
        out_shape=jax.ShapeDtypeStruct((rows, cols), dtype),
        grid=grid,
        in_specs=[pl.BlockSpec((tile_rows, cols), lambda i: (i, 0))],
        out_specs=pl.BlockSpec((tile_rows, cols), lambda i: (i, 0)),
        # Alias input 0 -> output 0: no separate output HBM buffer; with caller
        # donation the whole round-trip is elided by XLA.
        input_output_aliases={0: 0},
        compiler_params=pltpu.CompilerParams(
            dimension_semantics=("parallel",),
        ),
    )(x2d)
    return y2d.reshape(orig_shape)


def synthetic_diffusion_model(x, t=None, context=None, **kwargs):
    """Deterministic stand-in for the wrapped diffusion_model.

    # TODO(synk): the real diffusion_model (e.g. a UNet) is an external
    # dependency injected at construction time; only its call contract
    # (tensor in -> tensor out of identical shape/dtype) is reproduced here.
    """
    return _pallas_identity(x)


class IdentityWrapper:
    """JAX/Pallas port of sgm IdentityWrapper: pure delegation to the model."""

    def __init__(self, diffusion_model, compile_model: bool = False):
        # torch.compile analogue: jax.jit when requested, else pass-through.
        # (Callers wanting a true zero-copy identity can additionally donate x.)
        compile_fn = jax.jit if compile_model else (lambda f: f)
        self.diffusion_model = compile_fn(diffusion_model)

    def __call__(self, *args, **kwargs):
        return self.diffusion_model(*args, **kwargs)


if __name__ == "__main__":
    key = jax.random.PRNGKey(0)
    kx, kt, kc = jax.random.split(key, 3)

    # Latent-diffusion-style small inputs: NCHW latent, per-sample timesteps,
    # cross-attention context (forwarded per the *args/**kwargs contract).
    x = jax.random.normal(kx, (2, 4, 16, 16), dtype=jnp.float32)
    t = jax.random.uniform(kt, (2,), dtype=jnp.float32) * 1000.0
    context = jax.random.normal(kc, (2, 8, 32), dtype=jnp.float32)

    wrapper = IdentityWrapper(synthetic_diffusion_model, compile_model=False)
    out = wrapper(x, t, context=context)
    out = jax.block_until_ready(out)

    assert out.shape == x.shape and out.dtype == x.dtype
    assert bool(jnp.allclose(out, x))
    print("KERNEL_OK")
</pallas_src>

<mosaic_0001>
module attributes {stable_mosaic.version = 11 : i64} {
  func.func @_identity_kernel(%arg0: i32, %arg1: memref<1x2048xf32, #tpu.memory_space<vmem>>, %arg2: memref<1x2048xf32, #tpu.memory_space<vmem>>) attributes {dimension_semantics = [#tpu.dimension_semantics<parallel>], iteration_bounds = array<i64: 1>, scalar_prefetch = 0 : i64, scratch_operands = 0 : i64, tpu.core_type = #tpu.core_type<tc>, window_params = [{transform_indices = @transform_0, window_bounds = array<i64: 1, 2048>}, {transform_indices = @transform_1, window_bounds = array<i64: 1, 2048>}]} {
    %c0 = arith.constant 0 : index
    %c0_0 = arith.constant 0 : index
    %0 = vector.load %arg1[%c0, %c0_0] : memref<1x2048xf32, #tpu.memory_space<vmem>>, vector<1x2048xf32>
    %c0_1 = arith.constant 0 : index
    %c0_2 = arith.constant 0 : index
    %1 = vector.load %arg2[%c0_1, %c0_2] : memref<1x2048xf32, #tpu.memory_space<vmem>>, vector<1x2048xf32>
    tpu.vector_store %arg2[%c0_1, %c0_2], %0 {strides = array<i32>} : memref<1x2048xf32, #tpu.memory_space<vmem>>, vector<1x2048xf32>,
    return
  }
  func.func @transform_0(%arg0: i32) -> (i32, i32) {
    %c0_i32 = arith.constant 0 : i32
    %c0_i32_0 = arith.constant 0 : i32
    return %arg0, %c0_i32 : i32, i32
  }
  func.func @transform_1(%arg0: i32) -> (i32, i32) {
    %c0_i32 = arith.constant 0 : i32
    %c0_i32_0 = arith.constant 0 : i32
    return %arg0, %c0_i32 : i32, i32
  }
}

</mosaic_0001>

<bundles_post_ra>
// kernel: tpu_custom_call.1
= control target key start
LH: loop header
LB: loop body
LE: loop exit
PB: predicated region body
PF: predicated region fallthrough
CT: control target
= control target key end

     0   :  { %6 = vsyncpa [#allocation3], 0  ;;  %s104_s0 = inlined_call_operand.hbm [shape: f32[1,2048], index: 0, kind: input, shape index: {}, may-alias: {0,1}]   ;;  %s105_s1 = inlined_call_operand.hbm [shape: f32[1,2048], index: 1, kind: output, shape index: {}, may-alias: {0,1}]  }
   0x1   :  { %7 = vsyncpa [#allocation4], 0  ;;  %s86_s6 = smov [#allocation2]  }
   0x2   :  { %s14_s7 = sshll.u32 %s86_s6, 4  ;;  %s15_s7 = int_to_ptr.vmem [resolvable:$true] %s14_s7 }
   0x3   :  { %s50_s8 = scalar_lea.vmem %s15_s7, 256  ;;  %p55_p1 = scmp.lt.s32.totalorder %s15_s7, %s15_s7 }
   0x4   :  { %p51_p0 = scmp.ne.s32.totalorder %s15_s7, %s50_s8  ;;  %p56_p2 = scmp.lt.s32.totalorder %s50_s8, %s50_s8 }
   0x6   :  { %p57_p3 = por %p56_p2, %p55_p1 }
   0x8   :  { %p58_p4 = pnand %p57_p3, %p51_p0 }
   0xa   :  { %61 = shalt.err (!%p58_p4)
}
   0xb   :  { %17 = dma.hbm_to_vmem [thread:$0]  %s104_s0, 256, %s15_s7, [#allocation3]  }
   0xc   :  { %82 = dma.done.wait [#allocation3], 256  }
   0xd   :  { %83 = vsyncadd [#allocation3], 4294967040  ;;  %s87_s11 = smov [#allocation5]   ;;  %v21_v0 = vld [vmem:[#allocation2] sm:$0xff]  ;;  %v22_v1 = vld [vmem:[#allocation2 + $0x8] sm:$0xff] }
   0xe   :  { %s31_s12 = sshll.u32 %s87_s11, 4  ;;  %23 = vst [vmem:[#allocation5] sm:$0xff] %v21_v0  ;;  %24 = vst [vmem:[#allocation5 + $0x8] sm:$0xff] %v22_v1  ;;  %s32_s12 = int_to_ptr.vmem [resolvable:$true] %s31_s12 }
   0xf   :  { %s62_s13 = scalar_lea.vmem %s32_s12, 256  ;;  %p67_p6 = scmp.lt.s32.totalorder %s32_s12, %s32_s12 }
  0x10   :  { %p63_p5 = scmp.ne.s32.totalorder %s32_s12, %s62_s13  ;;  %p68_p7 = scmp.lt.s32.totalorder %s62_s13, %s62_s13 }
  0x12   :  { %p69_p8 = por %p68_p7, %p67_p6 }
  0x14   :  { %p70_p9 = pnand %p69_p8, %p63_p5 }
  0x16   :  { %73 = shalt.err (!%p70_p9)
}
  0x17   :  { %34 = dma.vmem_to_hbm [thread:$0]  %s32_s12, 256, %s105_s1, [#allocation4]  }
  0x18   :  { %84 = dma.done.wait [#allocation4], 256  }
  0x19   :  { %85 = vsyncadd [#allocation4], 4294967040 }
  0x1a   :  { %38 = vsyncpa [#allocation3], 1 }
  0x1b   :  { %39 = vsyncpa [#allocation4], 1 }

</bundles_post_ra>
